<compile_context>
chip_gen: v7x
topology: tpu7x:2x2x1
jax: 0.10.0
libtpu: 0.0.40
codegen_flags: <defaults>
</compile_context>

<pallas_src>
import jax
import jax.numpy as jnp
from jax.experimental import pallas as pl
from jax.experimental.pallas import tpu as pltpu


def _classifier_kernel(ids_ref, tgt_ref, emb_ref, w_ref, b_ref,
                       logp_ref, loss_ref):
    Bt, S = ids_ref.shape
    V, H = emb_ref.shape
    L = logp_ref.shape[1]

    ids = ids_ref[...]                                              # (Bt, S) int32
    vocab_iota = jax.lax.broadcasted_iota(jnp.int32, (Bt, V), 1)    # (Bt, V)

    # --- bag-of-words counts with the mean pool folded in (VPU only) ---
    # counts[b, v] = (1/S) * #{s : ids[b, s] == v}
    counts = (vocab_iota == ids[:, 0:1]).astype(jnp.float32)
    for s in range(1, S):                       # static unroll, S is small
        counts = counts + (vocab_iota == ids[:, s:s + 1]).astype(jnp.float32)
    counts = counts * (1.0 / S)                                     # (Bt, V)

    # --- pooled embeddings: single MXU matmul, f32 accumulation ---
    pooled = jnp.dot(counts.astype(emb_ref.dtype), emb_ref[...],
                     preferred_element_type=jnp.float32)            # (Bt, H)

    # --- linear layer: contract H against weight's dim 1 (torch [L, H] layout,
    #     no wrapper transpose; MXU consumes the transposed operand natively) ---
    logits = jax.lax.dot_general(
        pooled.astype(w_ref.dtype), w_ref[...],
        dimension_numbers=(((1,), (1,)), ((), ())),
        preferred_element_type=jnp.float32) + b_ref[...]            # (Bt, L)

    # --- log_softmax over the label dimension ---
    m = jnp.max(logits, axis=-1, keepdims=True)
    shifted = logits - m
    lse = jnp.log(jnp.sum(jnp.exp(shifted), axis=-1, keepdims=True))
    log_probs = shifted - lse                                       # (Bt, L)
    logp_ref[...] = log_probs

    # --- NLL loss with one-hot target: loss[b] = -log_probs[b, target[b]] ---
    lab_iota = jax.lax.broadcasted_iota(jnp.int32, (Bt, L), 1)      # (Bt, L)
    tgt_one_hot = (lab_iota == tgt_ref[...]).astype(jnp.float32)    # (Bt, L)
    loss_ref[...] = -jnp.sum(tgt_one_hot * log_probs,
                             axis=-1, keepdims=True)                # (Bt, 1)


def _pick_batch_tile(B):
    """Largest multiple-of-8 tile <= 128 that divides B; else the full batch."""
    for bt in (128, 64, 32, 16, 8):
        if B % bt == 0:
            return bt
    return B


def word_embedding_classifier_forward_batched(ids, targets, emb_table, weight,
                                              bias, *, batch_tile=None):
    """ids: int32 [B, S]; targets: int32 [B]; emb_table: [V, H];
    weight: [L, H] (torch Linear layout); bias: [L]."""
    B, S = ids.shape
    V, H = emb_table.shape
    L = weight.shape[0]

    bt = _pick_batch_tile(B) if batch_tile is None else batch_tile
    assert B % bt == 0 and (bt % 8 == 0 or bt == B), (B, bt)
    grid = (B // bt,)

    ids = ids.astype(jnp.int32)
    tgt2d = targets.astype(jnp.int32).reshape(B, 1)
    b2d = bias.astype(jnp.float32).reshape(1, L)

    flops = B * (S * V + 2 * V * H + 2 * H * L + 6 * L)
    bytes_accessed = (ids.size * 4 + tgt2d.size * 4
                      + emb_table.size * emb_table.dtype.itemsize
                      + weight.size * weight.dtype.itemsize
                      + b2d.size * 4 + B * L * 4 + B * 4)

    log_probs, loss = pl.pallas_call(
        _classifier_kernel,
        out_shape=(
            jax.ShapeDtypeStruct((B, L), jnp.float32),
            jax.ShapeDtypeStruct((B, 1), jnp.float32),
        ),
        grid_spec=pltpu.PrefetchScalarGridSpec(
            num_scalar_prefetch=0,
            grid=grid,
            in_specs=[
                pl.BlockSpec((bt, S), lambda i: (i, 0)),   # ids
                pl.BlockSpec((bt, 1), lambda i: (i, 0)),   # targets
                pl.BlockSpec((V, H), lambda i: (0, 0)),    # embedding table
                pl.BlockSpec((L, H), lambda i: (0, 0)),    # linear weight
                pl.BlockSpec((1, L), lambda i: (0, 0)),    # bias
            ],
            out_specs=[
                pl.BlockSpec((bt, L), lambda i: (i, 0)),   # log_probs
                pl.BlockSpec((bt, 1), lambda i: (i, 0)),   # loss
            ],
        ),
        compiler_params=pltpu.CompilerParams(
            dimension_semantics=("parallel",)),
        cost_estimate=pl.CostEstimate(
            flops=flops, transcendentals=B * (L + 1),
            bytes_accessed=bytes_accessed),
    )(ids, tgt2d, emb_table, weight, b2d)

    return {"loss": loss[:, 0], "log_probs": log_probs}


def word_embedding_classifier_forward(one_hot_sentence, target, emb_table,
                                      weight, bias):
    """Single-sentence forward, matching the PyTorch module's signature."""
    ids2d = jnp.asarray(one_hot_sentence, jnp.int32).reshape(1, -1)
    tgt = jnp.asarray(target, jnp.int32).reshape(1)
    out = word_embedding_classifier_forward_batched(ids2d, tgt, emb_table,
                                                    weight, bias)
    return {"loss": out["loss"][0], "log_probs": out["log_probs"][0]}


def _reference_forward(ids, target, emb_table, weight, bias):
    embedded = emb_table[ids]                        # (S, H)
    pooled = jnp.mean(embedded, axis=0)              # (H,)
    logits = pooled @ weight.T + bias                # (L,)
    log_probs = jax.nn.log_softmax(logits, axis=0)
    loss = -log_probs[target]
    return {"loss": loss, "log_probs": log_probs}


if __name__ == "__main__":
    # Small synthetic shapes implied by the module.
    VOCAB_SIZE = 64
    NUM_LABELS = 4
    HIDDEN_SIZE = 32
    SEQ_LEN = 8
    BATCH = 16

    key = jax.random.PRNGKey(0)
    k_emb, k_w, k_b, k_ids, k_tgt = jax.random.split(key, 5)

    # Deterministic parameter init (torch shapes; Embedding ~ N(0,1),
    # Linear ~ U(-1/sqrt(H), 1/sqrt(H))).
    emb_table = jax.random.normal(k_emb, (VOCAB_SIZE, HIDDEN_SIZE), jnp.float32)
    bound = 1.0 / (HIDDEN_SIZE ** 0.5)
    weight = jax.random.uniform(k_w, (NUM_LABELS, HIDDEN_SIZE), jnp.float32,
                                minval=-bound, maxval=bound)
    bias = jax.random.uniform(k_b, (NUM_LABELS,), jnp.float32,
                              minval=-bound, maxval=bound)

    ids = jax.random.randint(k_ids, (BATCH, SEQ_LEN), 0, VOCAB_SIZE,
                             dtype=jnp.int32)
    targets = jax.random.randint(k_tgt, (BATCH,), 0, NUM_LABELS,
                                 dtype=jnp.int32)

    # Reference (per-sentence, matching the PyTorch module).
    ref = jax.vmap(_reference_forward, in_axes=(0, 0, None, None, None))(
        ids, targets, emb_table, weight, bias)

    # 1) Batched kernel, default (largest) batch tile.
    out = jax.block_until_ready(
        word_embedding_classifier_forward_batched(ids, targets, emb_table,
                                                  weight, bias))
    assert jnp.allclose(out["log_probs"], ref["log_probs"], atol=1e-5)
    assert jnp.allclose(out["loss"], ref["loss"], atol=1e-5)

    # 2) Batched kernel with a smaller tile -> multi-step parallel grid.
    out_tiled = jax.block_until_ready(
        word_embedding_classifier_forward_batched(ids, targets, emb_table,
                                                  weight, bias, batch_tile=8))
    assert jnp.allclose(out_tiled["log_probs"], ref["log_probs"], atol=1e-5)
    assert jnp.allclose(out_tiled["loss"], ref["loss"], atol=1e-5)

    # 3) Single-sentence wrapper (original module semantics).
    single = jax.block_until_ready(
        word_embedding_classifier_forward(ids[0], targets[0], emb_table,
                                          weight, bias))
    ref0 = _reference_forward(ids[0], targets[0], emb_table, weight, bias)
    assert jnp.allclose(single["log_probs"], ref0["log_probs"], atol=1e-5)
    assert jnp.allclose(single["loss"], ref0["loss"], atol=1e-5)

    print("KERNEL_OK")
</pallas_src>

<mosaic_0001>
module attributes {stable_mosaic.version = 11 : i64} {
  func.func @_classifier_kernel(%arg0: i32, %arg1: memref<16x8xi32, #tpu.memory_space<vmem>>, %arg2: memref<16x1xi32, #tpu.memory_space<vmem>>, %arg3: memref<64x32xf32, #tpu.memory_space<vmem>>, %arg4: memref<4x32xf32, #tpu.memory_space<vmem>>, %arg5: memref<1x4xf32, #tpu.memory_space<vmem>>, %arg6: memref<16x4xf32, #tpu.memory_space<vmem>>, %arg7: memref<16x1xf32, #tpu.memory_space<vmem>>) attributes {dimension_semantics = [#tpu.dimension_semantics<parallel>], iteration_bounds = array<i64: 1>, scalar_prefetch = 0 : i64, scratch_operands = 0 : i64, tpu.core_type = #tpu.core_type<tc>, window_params = [{transform_indices = @transform_0, window_bounds = array<i64: 16, 8>}, {transform_indices = @transform_1, window_bounds = array<i64: 16, 1>}, {pipeline_mode = #tpu.pipeline_mode<synchronous>, transform_indices = @transform_2, window_bounds = array<i64: 64, 32>}, {pipeline_mode = #tpu.pipeline_mode<synchronous>, transform_indices = @transform_3, window_bounds = array<i64: 4, 32>}, {pipeline_mode = #tpu.pipeline_mode<synchronous>, transform_indices = @transform_4, window_bounds = array<i64: 1, 4>}, {transform_indices = @transform_5, window_bounds = array<i64: 16, 4>}, {transform_indices = @transform_6, window_bounds = array<i64: 16, 1>}]} {
    %c0 = arith.constant 0 : index
    %c0_0 = arith.constant 0 : index
    %0 = vector.load %arg1[%c0, %c0_0] : memref<16x8xi32, #tpu.memory_space<vmem>>, vector<16x8xi32>
    %1 = tpu.iota {dimensions = array<i32: 1>} : vector<16x64xi32>
    %2 = vector.extract_strided_slice %0 {offsets = [0, 0], sizes = [16, 1], strides = [1, 1]} : vector<16x8xi32> to vector<16x1xi32>
    %3 = vector.broadcast %2 : vector<16x1xi32> to vector<16x64xi32>
    %4 = arith.cmpi eq, %1, %3 : vector<16x64xi32>
    %5 = arith.extui %4 : vector<16x64xi1> to vector<16x64xi32>
    %6 = arith.sitofp %5 : vector<16x64xi32> to vector<16x64xf32>
    %7 = vector.extract_strided_slice %0 {offsets = [0, 1], sizes = [16, 1], strides = [1, 1]} : vector<16x8xi32> to vector<16x1xi32>
    %8 = vector.broadcast %7 : vector<16x1xi32> to vector<16x64xi32>
    %9 = arith.cmpi eq, %1, %8 : vector<16x64xi32>
    %10 = arith.extui %9 : vector<16x64xi1> to vector<16x64xi32>
    %11 = arith.sitofp %10 : vector<16x64xi32> to vector<16x64xf32>
    %12 = arith.addf %6, %11 : vector<16x64xf32>
    %13 = vector.extract_strided_slice %0 {offsets = [0, 2], sizes = [16, 1], strides = [1, 1]} : vector<16x8xi32> to vector<16x1xi32>
    %14 = vector.broadcast %13 : vector<16x1xi32> to vector<16x64xi32>
    %15 = arith.cmpi eq, %1, %14 : vector<16x64xi32>
    %16 = arith.extui %15 : vector<16x64xi1> to vector<16x64xi32>
    %17 = arith.sitofp %16 : vector<16x64xi32> to vector<16x64xf32>
    %18 = arith.addf %12, %17 : vector<16x64xf32>
    %19 = vector.extract_strided_slice %0 {offsets = [0, 3], sizes = [16, 1], strides = [1, 1]} : vector<16x8xi32> to vector<16x1xi32>
    %20 = vector.broadcast %19 : vector<16x1xi32> to vector<16x64xi32>
    %21 = arith.cmpi eq, %1, %20 : vector<16x64xi32>
    %22 = arith.extui %21 : vector<16x64xi1> to vector<16x64xi32>
    %23 = arith.sitofp %22 : vector<16x64xi32> to vector<16x64xf32>
    %24 = arith.addf %18, %23 : vector<16x64xf32>
    %25 = vector.extract_strided_slice %0 {offsets = [0, 4], sizes = [16, 1], strides = [1, 1]} : vector<16x8xi32> to vector<16x1xi32>
    %26 = vector.broadcast %25 : vector<16x1xi32> to vector<16x64xi32>
    %27 = arith.cmpi eq, %1, %26 : vector<16x64xi32>
    %28 = arith.extui %27 : vector<16x64xi1> to vector<16x64xi32>
    %29 = arith.sitofp %28 : vector<16x64xi32> to vector<16x64xf32>
    %30 = arith.addf %24, %29 : vector<16x64xf32>
    %31 = vector.extract_strided_slice %0 {offsets = [0, 5], sizes = [16, 1], strides = [1, 1]} : vector<16x8xi32> to vector<16x1xi32>
    %32 = vector.broadcast %31 : vector<16x1xi32> to vector<16x64xi32>
    %33 = arith.cmpi eq, %1, %32 : vector<16x64xi32>
    %34 = arith.extui %33 : vector<16x64xi1> to vector<16x64xi32>
    %35 = arith.sitofp %34 : vector<16x64xi32> to vector<16x64xf32>
    %36 = arith.addf %30, %35 : vector<16x64xf32>
    %37 = vector.extract_strided_slice %0 {offsets = [0, 6], sizes = [16, 1], strides = [1, 1]} : vector<16x8xi32> to vector<16x1xi32>
    %38 = vector.broadcast %37 : vector<16x1xi32> to vector<16x64xi32>
    %39 = arith.cmpi eq, %1, %38 : vector<16x64xi32>
    %40 = arith.extui %39 : vector<16x64xi1> to vector<16x64xi32>
    %41 = arith.sitofp %40 : vector<16x64xi32> to vector<16x64xf32>
    %42 = arith.addf %36, %41 : vector<16x64xf32>
    %43 = vector.extract_strided_slice %0 {offsets = [0, 7], sizes = [16, 1], strides = [1, 1]} : vector<16x8xi32> to vector<16x1xi32>
    %44 = vector.broadcast %43 : vector<16x1xi32> to vector<16x64xi32>
    %45 = arith.cmpi eq, %1, %44 : vector<16x64xi32>
    %46 = arith.extui %45 : vector<16x64xi1> to vector<16x64xi32>
    %47 = arith.sitofp %46 : vector<16x64xi32> to vector<16x64xf32>
    %48 = arith.addf %42, %47 : vector<16x64xf32>
    %cst = arith.constant 1.250000e-01 : f32
    %49 = vector.broadcast %cst : f32 to vector<16x64xf32>
    %50 = arith.mulf %48, %49 : vector<16x64xf32>
    %c0_1 = arith.constant 0 : index
    %c0_2 = arith.constant 0 : index
    %51 = vector.load %arg3[%c0_1, %c0_2] : memref<64x32xf32, #tpu.memory_space<vmem>>, vector<64x32xf32>
    %cst_3 = arith.constant dense<0.000000e+00> : vector<16x32xf32>
    %52 = tpu.matmul %50, %51, %cst_3 {dimension_numbers = #tpu.dot_dimension_numbers<[1], [0], [0], [1], [0, 0, 1, 1], [], []>} : vector<16x64xf32>, vector<64x32xf32>, vector<16x32xf32> -> vector<16x32xf32>
    %c0_4 = arith.constant 0 : index
    %c0_5 = arith.constant 0 : index
    %53 = vector.load %arg4[%c0_4, %c0_5] : memref<4x32xf32, #tpu.memory_space<vmem>>, vector<4x32xf32>
    %cst_6 = arith.constant dense<0.000000e+00> : vector<16x4xf32>
    %54 = tpu.matmul %52, %53, %cst_6 {dimension_numbers = #tpu.dot_dimension_numbers<[1], [1], [0], [0], [0, 0, 1, 0], [], []>} : vector<16x32xf32>, vector<4x32xf32>, vector<16x4xf32> -> vector<16x4xf32>
    %c0_7 = arith.constant 0 : index
    %c0_8 = arith.constant 0 : index
    %55 = vector.load %arg5[%c0_7, %c0_8] : memref<1x4xf32, #tpu.memory_space<vmem>>, vector<1x4xf32>
    %56 = vector.broadcast %55 : vector<1x4xf32> to vector<16x4xf32>
    %57 = arith.addf %54, %56 : vector<16x4xf32>
    %cst_9 = arith.constant dense<0xFF800000> : vector<16xf32>
    %58 = vector.multi_reduction <maximumf>, %57, %cst_9 [1] : vector<16x4xf32> to vector<16xf32>
    %59 = vector.shape_cast %58 : vector<16xf32> to vector<16x1xf32>
    %60 = vector.broadcast %59 : vector<16x1xf32> to vector<16x4xf32>
    %61 = arith.subf %57, %60 : vector<16x4xf32>
    %62 = math.exp %61 : vector<16x4xf32>
    %cst_10 = arith.constant dense<0.000000e+00> : vector<16xf32>
    %63 = vector.multi_reduction <add>, %62, %cst_10 [1] : vector<16x4xf32> to vector<16xf32>
    %64 = vector.shape_cast %63 : vector<16xf32> to vector<16x1xf32>
    %65 = math.log %64 : vector<16x1xf32>
    %66 = vector.broadcast %65 : vector<16x1xf32> to vector<16x4xf32>
    %67 = arith.subf %61, %66 : vector<16x4xf32>
    %c0_11 = arith.constant 0 : index
    %c0_12 = arith.constant 0 : index
    %68 = vector.load %arg6[%c0_11, %c0_12] : memref<16x4xf32, #tpu.memory_space<vmem>>, vector<16x4xf32>
    tpu.vector_store %arg6[%c0_11, %c0_12], %67 {strides = array<i32>} : memref<16x4xf32, #tpu.memory_space<vmem>>, vector<16x4xf32>,
    %69 = tpu.iota {dimensions = array<i32: 1>} : vector<16x4xi32>
    %c0_13 = arith.constant 0 : index
    %c0_14 = arith.constant 0 : index
    %70 = vector.load %arg2[%c0_13, %c0_14] : memref<16x1xi32, #tpu.memory_space<vmem>>, vector<16x1xi32>
    %71 = vector.broadcast %70 : vector<16x1xi32> to vector<16x4xi32>
    %72 = arith.cmpi eq, %69, %71 : vector<16x4xi32>
    %73 = arith.extui %72 : vector<16x4xi1> to vector<16x4xi32>
    %74 = arith.sitofp %73 : vector<16x4xi32> to vector<16x4xf32>
    %75 = arith.mulf %74, %67 : vector<16x4xf32>
    %cst_15 = arith.constant dense<0.000000e+00> : vector<16xf32>
    %76 = vector.multi_reduction <add>, %75, %cst_15 [1] : vector<16x4xf32> to vector<16xf32>
    %77 = vector.shape_cast %76 : vector<16xf32> to vector<16x1xf32>
    %cst_16 = arith.constant 0.000000e+00 : f32
    %78 = vector.broadcast %cst_16 : f32 to vector<16x1xf32>
    %79 = arith.subf %78, %77 : vector<16x1xf32>
    %c0_17 = arith.constant 0 : index
    %c0_18 = arith.constant 0 : index
    %80 = vector.load %arg7[%c0_17, %c0_18] : memref<16x1xf32, #tpu.memory_space<vmem>>, vector<16x1xf32>
    tpu.vector_store %arg7[%c0_17, %c0_18], %79 {strides = array<i32>} : memref<16x1xf32, #tpu.memory_space<vmem>>, vector<16x1xf32>,
    return
  }
  func.func @transform_0(%arg0: i32) -> (i32, i32) {
    %c0_i32 = arith.constant 0 : i32
    %c0_i32_0 = arith.constant 0 : i32
    return %arg0, %c0_i32 : i32, i32
  }
  func.func @transform_1(%arg0: i32) -> (i32, i32) {
    %c0_i32 = arith.constant 0 : i32
    %c0_i32_0 = arith.constant 0 : i32
    return %arg0, %c0_i32 : i32, i32
  }
  func.func @transform_2(%arg0: i32) -> (i32, i32) {
    %c0_i32 = arith.constant 0 : i32
    %c0_i32_0 = arith.constant 0 : i32
    %c0_i32_1 = arith.constant 0 : i32
    return %c0_i32, %c0_i32_0 : i32, i32
  }
  func.func @transform_3(%arg0: i32) -> (i32, i32) {
    %c0_i32 = arith.constant 0 : i32
    %c0_i32_0 = arith.constant 0 : i32
    %c0_i32_1 = arith.constant 0 : i32
    return %c0_i32, %c0_i32_0 : i32, i32
  }
  func.func @transform_4(%arg0: i32) -> (i32, i32) {
    %c0_i32 = arith.constant 0 : i32
    %c0_i32_0 = arith.constant 0 : i32
    %c0_i32_1 = arith.constant 0 : i32
    return %c0_i32, %c0_i32_0 : i32, i32
  }
  func.func @transform_5(%arg0: i32) -> (i32, i32) {
    %c0_i32 = arith.constant 0 : i32
    %c0_i32_0 = arith.constant 0 : i32
    return %arg0, %c0_i32 : i32, i32
  }
  func.func @transform_6(%arg0: i32) -> (i32, i32) {
    %c0_i32 = arith.constant 0 : i32
    %c0_i32_0 = arith.constant 0 : i32
    return %arg0, %c0_i32 : i32, i32
  }
}

</mosaic_0001>

<bundles_post_ra>
// kernel: tpu_custom_call.1
= control target key start
LH: loop header
LB: loop body
LE: loop exit
PB: predicated region body
PF: predicated region fallthrough
CT: control target
= control target key end

     0   :  { %v493_v0 = vmov 0   ;;  %v494_v3 = vmov 1   ;;  %v495_v4 = vmov 2   ;;  %v496_v5 = vmov 3   ;;  %s641_s0 = inlined_call_operand.vmem [shape: s32[16,8], index: 0, kind: input, shape index: {}]   ;;  %s642_s2 = inlined_call_operand.vmem [shape: f32[64,32], index: 2, kind: input, shape index: {}]   ;;  %s643_s3 = inlined_call_operand.vmem [shape: f32[4,32], index: 3, kind: input, shape index: {}]   ;;  %s644_s4 = inlined_call_operand.vmem [shape: f32[1,4], index: 4, kind: input, shape index: {}]   ;;  %s645_s1 = inlined_call_operand.vmem [shape: s32[16,1], index: 1, kind: input, shape index: {}]   ;;  %s646_s5 = inlined_call_operand.vmem [shape: f32[16,4], index: 5, kind: output, shape index: {0}]   ;;  %s647_s6 = inlined_call_operand.vmem [shape: f32[16,1], index: 6, kind: output, shape index: {1}]  }
   0x1   :  { %471 = vset.pattern.permute.xlu1 %v493_v0  ;;  %469 = vset.pattern.permute.xlu0 %v493_v0  ;;  %v23_v1 = vld [vmem:[%s641_s0 + $0x8] sm:$0xff]  ;;  %v22_v2 = vld [vmem:[%s641_s0] sm:$0xff]  ;;  %v497_v6 = vmov 4   ;;  %v498_v7 = vmov 5   ;;  %v499_v8 = vmov 7   ;;  %v500_v12 = vmov 6  }
   0x2   :  { %30 = vperm.xlu1 %471, %v23_v1   ;;  %27 = vperm.xlu0 %469, %v22_v2   ;;  %v138_v9 = vld [vmem:[%s642_s2] sm:$0xff]  ;;  %v139_v10 = vld [vmem:[%s642_s2 + $0x8] sm:$0xff]  ;;  %v140_v13 = vld [vmem:[%s642_s2 + $0x10] sm:$0xff]  ;;  %vm236_vm0 = vcmask 261120   ;;  %v24_v27 = vlaneseq  ;;  %v501_v33 = vmov 0.0  }
   0x3   :  { %v444_v11 = vpack.c.bf16 %v139_v10, %v138_v9  ;;  %v141_v14 = vld [vmem:[%s642_s2 + $0x18] sm:$0xff]  ;;  %v142_v16 = vld [vmem:[%s642_s2 + $0x20] sm:$0xff]  ;;  %v143_v17 = vld [vmem:[%s642_s2 + $0x28] sm:$0xff] }
   0x4   :  { %v448_v15 = vpack.c.bf16 %v141_v14, %v140_v13  ;;  %v452_v18 = vpack.c.bf16 %v143_v17, %v142_v16  ;;  %v144_v19 = vld [vmem:[%s642_s2 + $0x30] sm:$0xff]  ;;  %v145_v20 = vld [vmem:[%s642_s2 + $0x38] sm:$0xff]  ;;  %v228_v22 = vld [vmem:[%s643_s3] sm:$0xf]  ;;  %v572_v29 = vand.u32 127, %v24_v27 }
   0x5   :  { %445 = vmatprep.subr.bf16.mxu0 %v444_v11  ;;  %v456_v21 = vpack.c.bf16 %v145_v20, %v144_v19  ;;  %439 = vmatprep.subr.msk.mxu1 %vm236_vm0, %v228_v22 }
   0x6   :  { %472 = vset.pattern.permute.xlu1 %v494_v3  ;;  %470 = vset.pattern.permute.xlu0 %v494_v3 }
   0x7   :  { %42 = vperm.xlu1 %472, %v23_v1   ;;  %39 = vperm.xlu0 %470, %v22_v2  }
   0x8   :  { %447 = vmatpush3.bf16.msra.mxu0 %v444_v11  ;;  %440 = vmatpush3.xpose.msk.msra.mxu1 %vm236_vm0, %v228_v22 }
   0x9   :  { %449 = vmatprep.subr.bf16.mxu0 %v448_v15 }
   0xb   :  { %473 = vset.pattern.permute.xlu1 %v495_v4  ;;  %474 = vset.pattern.permute.xlu0 %v495_v4 }
   0xc   :  { %53 = vperm.xlu1 %473, %v22_v2   ;;  %56 = vperm.xlu0 %474, %v23_v1  }
   0xd   :  { %451 = vmatpush3.bf16.msra.mxu0 %v448_v15 }
   0xe   :  { %453 = vmatprep.subr.bf16.mxu0 %v452_v18 }
  0x10   :  { %475 = vset.pattern.permute.xlu1 %v496_v5  ;;  %476 = vset.pattern.permute.xlu0 %v497_v6 }
  0x11   :  { %67 = vperm.xlu1 %475, %v22_v2   ;;  %81 = vperm.xlu0 %476, %v22_v2  }
  0x12   :  { %455 = vmatpush3.bf16.msra.mxu0 %v452_v18 }
  0x13   :  { %457 = vmatprep.subr.bf16.mxu0 %v456_v21 }
  0x15   :  { %70 = vperm.xlu1 %475, %v23_v1   ;;  %479 = vset.pattern.permute.xlu0 %v498_v7 }
  0x16   :  { %98 = vperm.xlu0 %479, %v23_v1   ;;  %459 = vmatpush3.bf16.msra.mxu0 %v456_v21 }
  0x19   :  { %477 = vset.pattern.permute.xlu1 %v497_v6 }
  0x1a   :  { %84 = vperm.xlu1 %477, %v23_v1   ;;  %481 = vset.pattern.permute.xlu0 %v499_v8 }
  0x1b   :  { %123 = vperm.xlu0 %481, %v22_v2  }
  0x1e   :  { %478 = vset.pattern.permute.xlu1 %v498_v7 }
  0x1f   :  { %95 = vperm.xlu1 %478, %v22_v2   ;;  %483 = vset.pattern.permute.xlu0 %v493_v0 }
  0x23   :  { %480 = vset.pattern.permute.xlu1 %v500_v12  ;;  %v401_v12 = vld [vmem:[%s644_s4] ss:$0 sm:$0xff] }
  0x24   :  { %109 = vperm.xlu1 %480, %v22_v2  }
  0x28   :  { %112 = vperm.xlu1 %480, %v23_v1  }
  0x2c   :  { %482 = vset.pattern.permute.xlu1 %v499_v8 }
  0x2d   :  { %126 = vperm.xlu1 %482, %v23_v1  }
  0x31   :  { %484 = vset.pattern.permute.xlu1 %v493_v0 }
  0x81   :  { %v31_v23 = vpop.permute.xlu1 %30  ;;  %v28_v25 = vpop.permute.xlu0 %27 }
  0x82   :  { %vm32_vm1 = vcmp.eq.s32.totalorder %v572_v29, %v28_v25  ;;  %vm33_vm7 = vcmp.eq.s32.totalorder %v572_v29, %v31_v23 }
  0x83   :  { %v383_v34 = vsel %vm32_vm1, 1.0, %v501_v33  ;;  %v384_v48 = vsel %vm33_vm7, 1.0, %v501_v33  ;;  %vm146_vm1 = vcmask 523264  }
  0x86   :  { %v43_v24 = vpop.permute.xlu1 %42  ;;  %v40_v28 = vpop.permute.xlu0 %39 }
  0x87   :  { %vm44_vm2 = vcmp.eq.s32.totalorder %v572_v29, %v40_v28  ;;  %vm45_vm5 = vcmp.eq.s32.totalorder %v572_v29, %v43_v24 }
  0x88   :  { %v385_v35 = vsel %vm44_vm2, 1.0, %v501_v33  ;;  %v386_v43 = vsel %vm45_vm5, 1.0, %v501_v33  ;;  %vm372_vm5 = vcmask 7168  }
  0x89   :  { %v50_v37 = vadd.f32 %v385_v35, %v383_v34  ;;  %v51_v50 = vadd.f32 %v386_v43, %v384_v48 }
  0x8b   :  { %v54_v26 = vpop.permute.xlu1 %53  ;;  %v57_v31 = vpop.permute.xlu0 %56 }
  0x8c   :  { %vm58_vm3 = vcmp.eq.s32.totalorder %v572_v29, %v54_v26  ;;  %vm59_vm8 = vcmp.eq.s32.totalorder %v572_v29, %v57_v31  ;;  %v348_v31 = vld [vmem:[%s645_s1] sm:$0xff] }
  0x8d   :  { %v387_v38 = vsel %vm58_vm3, 1.0, %v501_v33  ;;  %v388_v49 = vsel %vm59_vm8, 1.0, %v501_v33  ;;  %vm321_vm3 = vcmask 31744  }
  0x8e   :  { %v64_v42 = vadd.f32 %v387_v38, %v50_v37  ;;  %v65_v54 = vadd.f32 %v388_v49, %v51_v50 }
  0x90   :  { %v68_v30 = vpop.permute.xlu1 %67  ;;  %v82_v36 = vpop.permute.xlu0 %81 }
  0x91   :  { %vm72_vm4 = vcmp.eq.s32.totalorder %v572_v29, %v68_v30  ;;  %vm86_vm6 = vcmp.eq.s32.totalorder %v572_v29, %v82_v36  ;;  %v349_v30 = vld [vmem:[%s645_s1 + $0x8] sm:$0xff] }
  0x92   :  { %v389_v40 = vsel %vm72_vm4, 1.0, %v501_v33  ;;  %v391_v46 = vsel %vm86_vm6, 1.0, %v501_v33 }
  0x93   :  { %v78_v44 = vadd.f32 %v389_v40, %v64_v42 }
  0x94   :  { %v71_v32 = vpop.permute.xlu1 %70 }
  0x95   :  { %v99_v41 = vpop.permute.xlu0 %98  ;;  %vm73_vm9 = vcmp.eq.s32.totalorder %v572_v29, %v71_v32  ;;  %v92_v52 = vadd.f32 %v391_v46, %v78_v44 }
  0x96   :  { %v390_v53 = vsel %vm73_vm9, 1.0, %v501_v33  ;;  %vm101_vm14 = vcmp.eq.s32.totalorder %v572_v29, %v99_v41 }
  0x97   :  { %v79_v58 = vadd.f32 %v390_v53, %v65_v54  ;;  %v394_v0 = vsel %vm101_vm14, 1.0, %v501_v33 }
  0x99   :  { %v85_v39 = vpop.permute.xlu1 %84 }
  0x9a   :  { %v124_v47 = vpop.permute.xlu0 %123  ;;  %vm87_vm11 = vcmp.eq.s32.totalorder %v572_v29, %v85_v39 }
  0x9b   :  { %vm128_vm12 = vcmp.eq.s32.totalorder %v572_v29, %v124_v47  ;;  %v392_v56 = vsel %vm87_vm11, 1.0, %v501_v33 }
  0x9c   :  { %v397_v60 = vsel %vm128_vm12, 1.0, %v501_v33  ;;  %v93_v62 = vadd.f32 %v392_v56, %v79_v58 }
  0x9e   :  { %v96_v45 = vpop.permute.xlu1 %95  ;;  %v107_v4 = vadd.f32 %v394_v0, %v93_v62 }
  0x9f   :  { %vm100_vm10 = vcmp.eq.s32.totalorder %v572_v29, %v96_v45 }
  0xa0   :  { %v393_v51 = vsel %vm100_vm10, 1.0, %v501_v33 }
  0xa1   :  { %v106_v57 = vadd.f32 %v393_v51, %v92_v52 }
  0xa3   :  { %v110_v55 = vpop.permute.xlu1 %109 }
  0xa4   :  { %vm114_vm13 = vcmp.eq.s32.totalorder %v572_v29, %v110_v55 }
  0xa5   :  { %v395_v59 = vsel %vm114_vm13, 1.0, %v501_v33 }
  0xa6   :  { %v120_v61 = vadd.f32 %v395_v59, %v106_v57 }
  0xa7   :  { %v113_v63 = vpop.permute.xlu1 %112 }
  0xa8   :  { %vm115_vm15 = vcmp.eq.s32.totalorder %v572_v29, %v113_v63  ;;  %v134_v1 = vadd.f32 %v397_v60, %v120_v61 }
  0xa9   :  { %v396_v2 = vsel %vm115_vm15, 1.0, %v501_v33 }
  0xaa   :  { %v136_v3 = vmul.f32 0.125, %v134_v1  ;;  %v121_v6 = vadd.f32 %v396_v2, %v107_v4 }
  0xac   :  { %v127_v5 = vpop.permute.xlu1 %126  ;;  %436 = vmatprep.mubr.msk.f32.mxu0 %vm146_vm1, %v136_v3 }
  0xad   :  { %vm129_vm2 = vcmp.eq.s32.totalorder %v572_v29, %v127_v5 }
  0xae   :  { %v398_v7 = vsel %vm129_vm2, 1.0, %v501_v33 }
  0xaf   :  { %v135_v8 = vadd.f32 %v398_v7, %v121_v6 }
  0xb1   :  { %v137_v9 = vmul.f32 0.125, %v135_v8 }
  0xb3   :  { %437 = vmatmul.mubr.msk.f32.vlgmr.msra.gmra.mrb[0].mxu0 %vm146_vm1, %v137_v9 }
 0x186   :  { %v438_v10 = vpop.f32.mrb[0].mxu0 }
 0x187   :  { %v219_v11 = vpop.f32.mrb[1].mxu0 }
 0x188   :  { %441 = vmatprep.mubr.msk.f32.mxu1 %vm236_vm0, %v219_v11 }
 0x189   :  { %442 = vmatmul.mubr.msk.f32.vlgmr.msra.gmra.mrb[0].mxu1 %vm236_vm0, %v438_v10 }
 0x25c   :  { %v443_v13 = vpop.f32.mrb[0].mxu1 }
 0x25d   :  { %v318_v14 = vadd.f32 %v443_v13, %v401_v12  ;;  %v312_v15 = vpop.f32.mrb[1].mxu1 }
 0x25e   :  { %v313_v16 = vadd.f32 %v401_v12, %v312_v15 }
 0x25f   :  { %v325_v17 = vsel %vm321_vm3, %v318_v14, -inf }
 0x260   :  { %326 = vmax.xlane.f32.xlu0 %v325_v17  ;;  %v322_v18 = vsel %vm321_vm3, %v313_v16, -inf }
 0x261   :  { %323 = vmax.xlane.f32.xlu1 %v322_v18 }
 0x2ed   :  { %v327_v19 = vpop.xlane.xlu0 %326 }
 0x2ee   :  { %v329_v20 = vsub.f32 %v318_v14, %v327_v19  ;;  %v324_v21 = vpop.xlane.xlu1 %323 }
 0x2ef   :  { %v328_v22 = vsub.f32 %v313_v16, %v324_v21 }
 0x2f0   :  { %v332_v23 = vmul.f32 1.442695, %v329_v20 }
 0x2f1   :  { %v330_v24 = vmul.f32 1.442695, %v328_v22 }
 0x2f2   :  { %485 = vpow2.f32 %v332_v23 }
 0x2f3   :  { %487 = vpow2.f32 %v330_v24 }
 0x2fc   :  { %v486_v25 = vpop.eup %485 }
 0x2fd   :  { %v488_v26 = vpop.eup %487  ;;  %v337_v27 = vsel %vm321_vm3, %v486_v25, 0.0 }
 0x2fe   :  { %338 = vadd.xlane.f32.xlu1 %v337_v27  ;;  %v334_v28 = vsel %vm321_vm3, %v488_v26, 0.0 }
 0x2ff   :  { %335 = vadd.xlane.f32.xlu0 %v334_v28 }
 0x30f   :  { %354 = vperm.xlu1 %484, %v349_v30  }
 0x315   :  { %351 = vperm.xlu0 %483, %v348_v31  }
 0x38b   :  { %v339_v32 = vpop.xlane.xlu1 %338 }
 0x38c   :  { %489 = vlog2.f32 %v339_v32  ;;  %v336_v34 = vpop.xlane.xlu0 %335 }
 0x38d   :  { %491 = vlog2.f32 %v336_v34 }
 0x38f   :  { %v355_v35 = vpop.permute.xlu1 %354 }
 0x390   :  { %vm357_vm0 = vcmp.eq.s32.totalorder %v572_v29, %v355_v35 }
 0x391   :  { %v406_v41 = vsel %vm357_vm0, 1.0, %v501_v33 }
 0x394   :  { %v352_v36 = vpop.permute.xlu0 %351 }
 0x395   :  { %vm356_vm4 = vcmp.eq.s32.totalorder %v572_v29, %v352_v36 }
 0x396   :  { %v490_v37 = vpop.eup %489  ;;  %v405_v42 = vsel %vm356_vm4, 1.0, %v501_v33 }
 0x397   :  { %v492_v38 = vpop.eup %491  ;;  %v343_v39 = vmul.f32 0.6931472, %v490_v37 }
 0x398   :  { %v341_v40 = vmul.f32 0.6931472, %v492_v38 }
 0x399   :  { %v345_v43 = vsub.f32 %v329_v20, %v343_v39 }
 0x39a   :  { %v344_v44 = vsub.f32 %v328_v22, %v341_v40 }
 0x39b   :  { %347 = vst.msk [vmem:[%s646_s5 + $0x8] sm:$0xff] %vm321_vm3, %v345_v43  ;;  %v363_v45 = vmul.f32 %v406_v41, %v345_v43 }
 0x39c   :  { %346 = vst.msk [vmem:[%s646_s5] sm:$0xff] %vm321_vm3, %v344_v44  ;;  %v362_v29 = vmul.f32 %v405_v42, %v344_v44 }
 0x39d   :  { %v367_v46 = vsel %vm321_vm3, %v363_v45, 0.0 }
 0x39e   :  { %368 = vadd.xlane.f32.xlu0 %v367_v46  ;;  %v364_v47 = vsel %vm321_vm3, %v362_v29, 0.0 }
 0x39f   :  { %365 = vadd.xlane.f32.xlu1 %v364_v47 }
 0x42b   :  { %v369_v33 = vpop.xlane.xlu0 %368 }
 0x42c   :  { %v371_v48 = vsub.f32 0.0, %v369_v33  ;;  %v366_v49 = vpop.xlane.xlu1 %365 }
 0x42d   :  { %v370_v50 = vsub.f32 0.0, %v366_v49 }
 0x42e   :  { %374 = vst.msk [vmem:[%s647_s6 + $0x8] sm:$0xff] %vm372_vm5, %v371_v48 }
 0x42f   :  { %373 = vst.msk [vmem:[%s647_s6] sm:$0xff] %vm372_vm5, %v370_v50 }

</bundles_post_ra>
